<compile_context>
chip_gen: v6e
topology: v6e:2x2x1
jax: 0.10.0
libtpu: 0.0.40
codegen_flags: <defaults>
</compile_context>

<pallas_src>
import jax
import jax.numpy as jnp
import numpy as np
from jax.experimental import pallas as pl
from jax.experimental.pallas import tpu as pltpu


_TARGET_BLOCK_BYTES = 2 << 20  # ~2 MiB/block: big enough for ~85%+ of HBM
                               # roofline, small enough that double-buffered
                               # in+out tiles fit easily in scoped VMEM.


def _copy_kernel(x_ref, o_ref):
    # Identity copy of the current lane-dense (tile_rows, cols) tile.
    o_ref[...] = x_ref[...]


def _choose_slab(total, itemsize):
    """Factor `total` elements into a lane/sublane-dense (rows, cols) slab and
    a row-tile size.  Searches (cols, tile_rows) jointly so large awkward
    shapes still get a VMEM-sized tile instead of one giant block."""
    for cols in (2048, 1024, 512, 256, 128):
        if total % cols != 0:
            continue
        rows = total // cols
        max_rows = max(1, _TARGET_BLOCK_BYTES // (cols * itemsize))
        if rows <= max_rows:
            # Whole slab is one block (full-dim blocks are always legal).
            return rows, cols, rows
        # Find a sublane-dense (multiple of 8) row tile that divides rows.
        t = (max_rows // 8) * 8
        while t >= 8:
            if rows % t == 0:
                return rows, cols, t
            t -= 8
        # No clean divisor with this lane width -- try a narrower cols.
    # total not a multiple of 128 (rare / tiny shapes): single full-array
    # block; full-dim block shapes are exempt from the (8, 128) rule.
    return 1, total, 1


def reshape_pallas(x, size):
    """Equivalent of Reshape(size).forward(x): y = x.view([x.shape[0], *size])."""
    b = x.shape[0]
    flat = int(np.prod(x.shape[1:])) if x.ndim > 1 else 1
    target_flat = int(np.prod(size)) if len(size) else 1
    assert flat == target_flat, (
        f"cannot reshape {x.shape[1:]} (={flat}) into {tuple(size)} "
        f"(={target_flat})"
    )

    total = b * flat
    itemsize = jnp.dtype(x.dtype).itemsize
    rows, cols, tile_rows = _choose_slab(total, itemsize)

    # Glue: row-major flatten into the lane-dense slab (order-preserving).
    # NOTE: in production this op is metadata-only (jnp.reshape); the
    # pallas_call exists as the explicit kernel / fusion anchor.
    x2d = x.reshape(rows, cols)

    y2d = pl.pallas_call(
        _copy_kernel,
        out_shape=jax.ShapeDtypeStruct((rows, cols), x.dtype),
        grid=(rows // tile_rows,),
        in_specs=[pl.BlockSpec((tile_rows, cols), lambda i: (i, 0))],
        out_specs=pl.BlockSpec((tile_rows, cols), lambda i: (i, 0)),
        compiler_params=pltpu.CompilerParams(
            dimension_semantics=("parallel",),
        ),
        cost_estimate=pl.CostEstimate(
            flops=0,
            transcendentals=0,
            bytes_accessed=2 * total * itemsize,
        ),
    )(x2d)

    # Glue: final row-major reshape to (B, *size).
    return y2d.reshape((b,) + tuple(size))


if __name__ == "__main__":
    key = jax.random.PRNGKey(0)
    # Example consistent with the module: x is (B, C, H, W) = (2, 4, 16, 16),
    # Reshape(size=[16, 64]) -> output (2, 16, 64).
    x = jax.random.normal(key, (2, 4, 16, 16), dtype=jnp.float32)
    size = [16, 64]

    y = reshape_pallas(x, size)
    y = jax.block_until_ready(y)

    # Correctness check against plain-JAX reshape (same semantics as torch .view).
    y_ref = x.reshape((x.shape[0],) + tuple(size))
    assert y.shape == (2, 16, 64), y.shape
    np.testing.assert_array_equal(np.asarray(y), np.asarray(y_ref))

    print("KERNEL_OK")
</pallas_src>

<mosaic_0001>
module attributes {stable_mosaic.version = 11 : i64} {
  func.func @_copy_kernel(%arg0: i32, %arg1: memref<1x2048xf32, #tpu.memory_space<vmem>>, %arg2: memref<1x2048xf32, #tpu.memory_space<vmem>>) attributes {dimension_semantics = [#tpu.dimension_semantics<parallel>], iteration_bounds = array<i64: 1>, scalar_prefetch = 0 : i64, scratch_operands = 0 : i64, tpu.core_type = #tpu.core_type<tc>, window_params = [{transform_indices = @transform_0, window_bounds = array<i64: 1, 2048>}, {transform_indices = @transform_1, window_bounds = array<i64: 1, 2048>}]} {
    %c0 = arith.constant 0 : index
    %c0_0 = arith.constant 0 : index
    %0 = vector.load %arg1[%c0, %c0_0] : memref<1x2048xf32, #tpu.memory_space<vmem>>, vector<1x2048xf32>
    %c0_1 = arith.constant 0 : index
    %c0_2 = arith.constant 0 : index
    %1 = vector.load %arg2[%c0_1, %c0_2] : memref<1x2048xf32, #tpu.memory_space<vmem>>, vector<1x2048xf32>
    tpu.vector_store %arg2[%c0_1, %c0_2], %0 {strides = array<i32>} : memref<1x2048xf32, #tpu.memory_space<vmem>>, vector<1x2048xf32>,
    return
  }
  func.func @transform_0(%arg0: i32) -> (i32, i32) {
    %c0_i32 = arith.constant 0 : i32
    %c0_i32_0 = arith.constant 0 : i32
    return %arg0, %c0_i32 : i32, i32
  }
  func.func @transform_1(%arg0: i32) -> (i32, i32) {
    %c0_i32 = arith.constant 0 : i32
    %c0_i32_0 = arith.constant 0 : i32
    return %arg0, %c0_i32 : i32, i32
  }
}

</mosaic_0001>

<bundles_post_ra>
// kernel: tpu_custom_call.1
= control target key start
LH: loop header
LB: loop body
LE: loop exit
PB: predicated region body
PF: predicated region fallthrough
CT: control target
= control target key end

     0   :  { %6 = vsyncpa [#allocation3], 0  ;;  %s104_s0 = inlined_call_operand.hbm [shape: f32[1,2048], index: 0, kind: input, shape index: {}]   ;;  %s105_s1 = inlined_call_operand.hbm [shape: f32[1,2048], index: 1, kind: output, shape index: {}]  }
   0x1   :  { %7 = vsyncpa [#allocation4], 0  ;;  %s86_s6 = smov [#allocation2]  }
   0x2   :  { %s14_s7 = sshll.u32 %s86_s6, 4  ;;  %s15_s7 = int_to_ptr.vmem [resolvable:$true] %s14_s7 }
   0x3   :  { %s50_s8 = scalar_lea.vmem %s15_s7, 256  ;;  %p55_p1 = scmp.lt.s32.totalorder %s15_s7, %s15_s7 }
   0x4   :  { %p51_p0 = scmp.ne.s32.totalorder %s15_s7, %s50_s8  ;;  %p56_p2 = scmp.lt.s32.totalorder %s50_s8, %s50_s8 }
   0x6   :  { %p57_p3 = por %p56_p2, %p55_p1 }
   0x8   :  { %p58_p4 = pnand %p57_p3, %p51_p0 }
   0xa   :  { %61 = shalt.err (!%p58_p4)
}
   0xb   :  { %17 = dma.hbm_to_vmem [thread:$0]  %s104_s0, 256, %s15_s7, [#allocation3]  }
   0xc   :  { %82 = dma.done.wait [#allocation3], 256  }
   0xd   :  { %83 = vsyncadd [#allocation3], 4294967040  ;;  %s87_s11 = smov [#allocation5]   ;;  %v21_v0 = vld [vmem:[#allocation2] sm:$0xff]  ;;  %v22_v1 = vld [vmem:[#allocation2 + $0x8] sm:$0xff] }
   0xe   :  { %s31_s12 = sshll.u32 %s87_s11, 4  ;;  %23 = vst [vmem:[#allocation5] sm:$0xff] %v21_v0  ;;  %24 = vst [vmem:[#allocation5 + $0x8] sm:$0xff] %v22_v1  ;;  %s32_s12 = int_to_ptr.vmem [resolvable:$true] %s31_s12 }
   0xf   :  { %s62_s13 = scalar_lea.vmem %s32_s12, 256  ;;  %p67_p6 = scmp.lt.s32.totalorder %s32_s12, %s32_s12 }
  0x10   :  { %p63_p5 = scmp.ne.s32.totalorder %s32_s12, %s62_s13  ;;  %p68_p7 = scmp.lt.s32.totalorder %s62_s13, %s62_s13 }
  0x12   :  { %p69_p8 = por %p68_p7, %p67_p6 }
  0x14   :  { %p70_p9 = pnand %p69_p8, %p63_p5 }
  0x16   :  { %73 = shalt.err (!%p70_p9)
}
  0x17   :  { %34 = dma.vmem_to_hbm [thread:$0]  %s32_s12, 256, %s105_s1, [#allocation4]  }
  0x18   :  { %84 = dma.done.wait [#allocation4], 256  }
  0x19   :  { %85 = vsyncadd [#allocation4], 4294967040 }
  0x1a   :  { %38 = vsyncpa [#allocation3], 1 }
  0x1b   :  { %39 = vsyncpa [#allocation4], 1 }

</bundles_post_ra>
